<compile_context>
chip_gen: v7x
topology: tpu7x:2x2x1
jax: 0.10.0
libtpu: 0.0.40
codegen_flags: <defaults>
</compile_context>

<pallas_src>
import functools

import jax
import jax.numpy as jnp
from jax.experimental import pallas as pl
from jax.experimental.pallas import tpu as pltpu


def _round_up(x, m):
    return (x + m - 1) // m * m


def _mlp_block_fc_kernel(x_ref, wt_ref, ss_ref, o_ref):
    # Linear (no bias): bf16 MXU matmul with f32 accumulation.  The x cast rides on VPU
    # slots that have huge slack in this mem-bound regime.
    x_bf = x_ref[...].astype(jnp.bfloat16)
    y = jnp.dot(x_bf, wt_ref[...], preferred_element_type=jnp.float32)
    # BatchNorm1d (inference) folded into a per-feature affine: y * scale + shift.
    scale = ss_ref[0:1, :]
    shift = ss_ref[1:2, :]
    y = y * scale + shift
    # LeakyReLU(negative_slope=0.2).
    y = jnp.where(y >= 0.0, y, 0.2 * y)
    # Dropout(p) is identity in eval mode.
    o_ref[...] = y.astype(o_ref.dtype)


def mlp_block_fc(x, weight, gamma, beta, running_mean, running_var,
                 eps=1e-5, tile_m=None, tile_n=None, out_dtype=None,
                 vmem_budget_bytes=None):
    """Fused eval-mode MLPBlockFC forward.

    x:      (N, d_points)  (PyTorch nn.Linear layout: batch x features)
    weight: (d_model, d_points) as in nn.Linear (bias=False)
    Returns (N, d_model) in `out_dtype` (defaults to x.dtype).

    Note: the matmul operands are rounded to bf16 (f32 accumulation), so results deviate
    from a pure-f32 PyTorch Linear at the ~1e-3 relative level.
    """
    N, d_points = x.shape
    d_model = weight.shape[0]

    out_dtype = jnp.dtype(x.dtype) if out_dtype is None else jnp.dtype(out_dtype)
    xb = jnp.dtype(x.dtype).itemsize
    ob = out_dtype.itemsize

    # Generation-aware VMEM budget (v7x: 64 MiB -> ~38 MiB; v5e/v6e: 128 MiB -> ~76 MiB).
    try:
        vmem_cap = int(pltpu.get_tpu_info().vmem_capacity_bytes)
    except Exception:  # pragma: no cover - conservative fallback
        vmem_cap = 64 << 20
    if vmem_budget_bytes is None:
        vmem_budget_bytes = int(0.6 * vmem_cap)

    # --- feature (d_model) tiling: only kicks in when the resident W^T block is too big ---
    def _wt_bytes(tn):
        # two pipeline buffers each for the bf16 W^T tile and the f32 (2, tn) scale/shift
        return 2 * d_points * tn * 2 + 2 * 2 * tn * 4

    if tile_n is None:
        if _wt_bytes(d_model) <= vmem_budget_bytes // 2 or d_model <= 128:
            tile_n = d_model            # full feature dim: legal block, no lane padding
        else:
            tile_n = (vmem_budget_bytes // 2) // (2 * (d_points * 2 + 2 * 4))
            tile_n = max(128, tile_n // 128 * 128)
            tile_n = min(tile_n, (d_model // 128) * 128 if d_model >= 128 else d_model)
    if tile_n >= d_model:
        tile_n = d_model

    # --- row (batch) tiling: as large as the VMEM budget allows, capped at 8192 rows ---
    wt_ss = _wt_bytes(tile_n)
    per_row = 2 * (d_points * xb + tile_n * ob)       # double-buffered x row + out row
    tile_m_max = max(8, max(vmem_budget_bytes - wt_ss, per_row * 8) // per_row)
    if tile_m is None:
        tile_m = 8192                                  # few grid steps, long DMAs
    tile_m = min(tile_m, tile_m_max, _round_up(N, 8))
    tile_m = max(8, (tile_m // 8) * 8)

    n_m = pl.cdiv(N, tile_m)
    n_n = pl.cdiv(d_model, tile_n)

    # Keep >= 2 grid steps for medium/large N so both v7x TensorCores participate.
    if n_m * n_n == 1 and N >= 1024:
        tile_m = max(8, _round_up(pl.cdiv(N, 2), 8))
        n_m = pl.cdiv(N, tile_m)

    # --- wrapper-side prep: only the (tiny) weight / BN params, x stays untouched in HBM ---
    wt_bf = weight.T.astype(jnp.bfloat16)                                 # (d_points, d_model)
    scale = gamma / jnp.sqrt(running_var + eps)
    shift = beta - running_mean * scale
    scale_shift = jnp.stack([scale, shift], axis=0).astype(jnp.float32)   # (2, d_model)

    tile_bytes = 2 * tile_m * d_points * xb + 2 * tile_m * tile_n * ob + wt_ss
    vmem_limit = int(min(max(tile_bytes + (2 << 20), 16 << 20), int(0.7 * vmem_cap)))

    # TODO(synk): the grid-invariant W^T / scale_shift blocks could use
    #             pipeline_mode=pl.Buffered(1) to drop their redundant second buffer;
    #             negligible at these layer sizes so left at the default for robustness.
    return pl.pallas_call(
        _mlp_block_fc_kernel,
        out_shape=jax.ShapeDtypeStruct((N, d_model), out_dtype),
        grid_spec=pltpu.PrefetchScalarGridSpec(
            num_scalar_prefetch=0,
            grid=(n_m, n_n),
            in_specs=[
                pl.BlockSpec((tile_m, d_points), lambda i, j: (i, 0)),
                pl.BlockSpec((d_points, tile_n), lambda i, j: (0, j)),
                pl.BlockSpec((2, tile_n), lambda i, j: (0, j)),
            ],
            out_specs=pl.BlockSpec((tile_m, tile_n), lambda i, j: (i, j)),
        ),
        compiler_params=pltpu.CompilerParams(
            dimension_semantics=("parallel", "parallel"),
            vmem_limit_bytes=vmem_limit),
    )(x, wt_bf, scale_shift)


def _reference(x, weight, gamma, beta, running_mean, running_var, eps=1e-5,
               bf16_inputs=True):
    if bf16_inputs:
        x = x.astype(jnp.bfloat16).astype(jnp.float32)
        weight = weight.astype(jnp.bfloat16).astype(jnp.float32)
    y = x @ weight.T
    y = (y - running_mean) / jnp.sqrt(running_var + eps) * gamma + beta
    return jnp.where(y >= 0.0, y, 0.2 * y)


if __name__ == "__main__":
    # Small shapes consistent with the module: d_points=32, d_model=64, batch N=16.
    N, d_points, d_model = 16, 32, 64
    key = jax.random.PRNGKey(0)
    kx, kw, kg, kb, km, kv = jax.random.split(key, 6)

    x = jax.random.normal(kx, (N, d_points), dtype=jnp.float32)
    weight = jax.random.normal(kw, (d_model, d_points), dtype=jnp.float32) * 0.1
    gamma = 1.0 + 0.1 * jax.random.normal(kg, (d_model,), dtype=jnp.float32)
    beta = 0.1 * jax.random.normal(kb, (d_model,), dtype=jnp.float32)
    running_mean = 0.1 * jax.random.normal(km, (d_model,), dtype=jnp.float32)
    running_var = jnp.abs(1.0 + 0.1 * jax.random.normal(kv, (d_model,), dtype=jnp.float32))

    args = (x, weight, gamma, beta, running_mean, running_var)

    # 1) Default path (single tile, f32 output).
    out = jax.block_until_ready(jax.jit(mlp_block_fc)(*args))
    assert out.shape == (N, d_model)
    ref_bf = _reference(*args, bf16_inputs=True)
    assert jnp.allclose(out, ref_bf, atol=2e-3, rtol=2e-3), "mismatch vs bf16-rounded reference"
    ref_f32 = _reference(*args, bf16_inputs=False)
    assert jnp.allclose(out, ref_f32, atol=3e-2, rtol=3e-2), "mismatch vs f32 reference"

    # 2) Multi-tile grid with a ragged last row block (no wrapper-side padding).
    N2 = 300
    x2 = jax.random.normal(kx, (N2, d_points), dtype=jnp.float32)
    args2 = (x2,) + args[1:]
    out2 = jax.block_until_ready(
        jax.jit(functools.partial(mlp_block_fc, tile_m=128))(*args2))
    assert out2.shape == (N2, d_model)
    ref2 = _reference(*args2, bf16_inputs=True)
    assert jnp.allclose(out2, ref2, atol=2e-3, rtol=2e-3), "mismatch on ragged multi-tile grid"

    # 3) bf16 output option (halves the dominant HBM write stream).
    out3 = jax.block_until_ready(
        jax.jit(functools.partial(mlp_block_fc, out_dtype=jnp.bfloat16))(*args))
    assert out3.dtype == jnp.bfloat16
    assert jnp.allclose(out3.astype(jnp.float32), ref_bf, atol=5e-2, rtol=5e-2), \
        "mismatch with bf16 output"

    print("KERNEL_OK")
</pallas_src>

<mosaic_0001>
module attributes {stable_mosaic.version = 11 : i64} {
  func.func @_mlp_block_fc_kernel(%arg0: i32, %arg1: i32, %arg2: memref<16x32xf32, #tpu.memory_space<vmem>>, %arg3: memref<32x64xbf16, #tpu.memory_space<vmem>>, %arg4: memref<2x64xf32, #tpu.memory_space<vmem>>, %arg5: memref<16x64xf32, #tpu.memory_space<vmem>>) attributes {dimension_semantics = [#tpu.dimension_semantics<parallel>, #tpu.dimension_semantics<parallel>], iteration_bounds = array<i64: 1, 1>, scalar_prefetch = 0 : i64, scratch_operands = 0 : i64, tpu.core_type = #tpu.core_type<tc>, window_params = [{transform_indices = @transform_0, window_bounds = array<i64: 16, 32>}, {transform_indices = @transform_1, window_bounds = array<i64: 32, 64>}, {transform_indices = @transform_2, window_bounds = array<i64: 2, 64>}, {transform_indices = @transform_3, window_bounds = array<i64: 16, 64>}]} {
    %c0 = arith.constant 0 : index
    %c0_0 = arith.constant 0 : index
    %0 = vector.load %arg2[%c0, %c0_0] : memref<16x32xf32, #tpu.memory_space<vmem>>, vector<16x32xf32>
    %1 = arith.truncf %0 : vector<16x32xf32> to vector<16x32xbf16>
    %c0_1 = arith.constant 0 : index
    %c0_2 = arith.constant 0 : index
    %2 = vector.load %arg3[%c0_1, %c0_2] : memref<32x64xbf16, #tpu.memory_space<vmem>>, vector<32x64xbf16>
    %cst = arith.constant dense<0.000000e+00> : vector<16x64xf32>
    %3 = tpu.matmul %1, %2, %cst {dimension_numbers = #tpu.dot_dimension_numbers<[1], [0], [0], [1], [0, 0, 1, 1], [], []>} : vector<16x32xbf16>, vector<32x64xbf16>, vector<16x64xf32> -> vector<16x64xf32>
    %c0_3 = arith.constant 0 : index
    %c0_4 = arith.constant 0 : index
    %4 = vector.load %arg4[%c0_3, %c0_4] : memref<2x64xf32, #tpu.memory_space<vmem>>, vector<1x64xf32>
    %c1 = arith.constant 1 : index
    %c0_5 = arith.constant 0 : index
    %5 = vector.load %arg4[%c1, %c0_5] : memref<2x64xf32, #tpu.memory_space<vmem>>, vector<1x64xf32>
    %6 = vector.broadcast %4 : vector<1x64xf32> to vector<16x64xf32>
    %7 = arith.mulf %3, %6 : vector<16x64xf32>
    %8 = vector.broadcast %5 : vector<1x64xf32> to vector<16x64xf32>
    %9 = arith.addf %7, %8 : vector<16x64xf32>
    %cst_6 = arith.constant 0.000000e+00 : f32
    %10 = vector.broadcast %cst_6 : f32 to vector<16x64xf32>
    %11 = arith.cmpf oge, %9, %10 : vector<16x64xf32>
    %cst_7 = arith.constant 2.000000e-01 : f32
    %12 = vector.broadcast %cst_7 : f32 to vector<16x64xf32>
    %13 = arith.mulf %12, %9 : vector<16x64xf32>
    %14 = arith.select %11, %9, %13 : vector<16x64xi1>, vector<16x64xf32>
    %c0_8 = arith.constant 0 : index
    %c0_9 = arith.constant 0 : index
    %15 = vector.load %arg5[%c0_8, %c0_9] : memref<16x64xf32, #tpu.memory_space<vmem>>, vector<16x64xf32>
    tpu.vector_store %arg5[%c0_8, %c0_9], %14 {strides = array<i32>} : memref<16x64xf32, #tpu.memory_space<vmem>>, vector<16x64xf32>,
    return
  }
  func.func @transform_0(%arg0: i32, %arg1: i32) -> (i32, i32) {
    %c0_i32 = arith.constant 0 : i32
    %c0_i32_0 = arith.constant 0 : i32
    return %arg0, %c0_i32 : i32, i32
  }
  func.func @transform_1(%arg0: i32, %arg1: i32) -> (i32, i32) {
    %c0_i32 = arith.constant 0 : i32
    %c0_i32_0 = arith.constant 0 : i32
    return %c0_i32, %arg1 : i32, i32
  }
  func.func @transform_2(%arg0: i32, %arg1: i32) -> (i32, i32) {
    %c0_i32 = arith.constant 0 : i32
    %c0_i32_0 = arith.constant 0 : i32
    return %c0_i32, %arg1 : i32, i32
  }
  func.func @transform_3(%arg0: i32, %arg1: i32) -> (i32, i32) {
    %c0_i32 = arith.constant 0 : i32
    return %arg0, %arg1 : i32, i32
  }
}

</mosaic_0001>

<bundles_post_ra>
// kernel: mlp_block_fc.1
= control target key start
LH: loop header
LB: loop body
LE: loop exit
PB: predicated region body
PF: predicated region fallthrough
CT: control target
= control target key end

     0   :  { %v166_v1 = vmov 0.0   ;;  %vm167_vm0 = vmmov 0   ;;  %s221_s0 = inlined_call_operand.vmem [shape: f32[16,32], index: 0, kind: input, shape index: {}]   ;;  %s222_s1 = inlined_call_operand.vmem [shape: bf16[32,64], index: 1, kind: input, shape index: {}]   ;;  %s223_s2 = inlined_call_operand.vmem [shape: f32[2,64], index: 2, kind: input, shape index: {}]   ;;  %s224_s3 = inlined_call_operand.hbm [shape: f32[16,64], index: 3, kind: output, shape index: {}]  }
   0x1   :  { %v140_v0 = vld [vmem:[%s222_s1] sm:$0xff]   ;;  %127 = vmatprep.subr.bf16.mxu0 %v166_v1  ;;  %v141_v2 = vld [vmem:[%s222_s1 + $0x8] sm:$0xff]   ;;  %131 = vmatprep.mubr.msk.bf16.mxu0 %vm167_vm0, %v166_v1 }
   0x2   :  { %128 = vmatpush3.bf16.msra.mxu0 %v140_v0  ;;  %v16_v3 = vld [vmem:[%s221_s0] sm:$0xff]  ;;  %v17_v4 = vld [vmem:[%s221_s0 + $0x8] sm:$0xff] }
   0x3   :  { %8 = vsyncpa [#allocation3], 0  ;;  %129 = vmatprep.subr.bf16.mxu0 %v166_v1  ;;  %v18_v5 = vpack.c.bf16 %v17_v4, %v16_v3  ;;  %vm35_vm1 = vcmask 261120   ;;  %v122_v6 = vld [vmem:[%s223_s2] ss:$0 sm:$0xff]  ;;  %s168_s0 = smov [#allocation2]  }
   0x4   :  { %v123_v8 = vld [vmem:[%s223_s2 + $0x1] ss:$0 sm:$0xff]  ;;  %s108_s23 = sshll.u32 %s168_s0, 4  ;;  %vm100_vm3 = vcmask 523264   ;;  %s109_s23 = int_to_ptr.vmem [resolvable:$true] %s108_s23 }
   0x5   :  { %s142_s2 = scalar_lea.vmem %s109_s23, 256  ;;  %p147_p1 = scmp.lt.s32.totalorder %s109_s23, %s109_s23 }
   0x6   :  { %130 = vmatpush3.bf16.msra.mxu0 %v141_v2  ;;  %p143_p0 = scmp.ne.s32.totalorder %s109_s23, %s142_s2  ;;  %p148_p2 = scmp.lt.s32.totalorder %s142_s2, %s142_s2 }
   0x8   :  { %p149_p3 = por %p148_p2, %p147_p1 }
   0x9   :  { %132 = vmatmul.mubr.msk.bf16.vlgmr.msra.gmra.mrb[0].mxu0 %vm35_vm1, %v18_v5 }
   0xa   :  { %p150_p4 = pnand %p149_p3, %p143_p0 }
  0xdc   :  { %v73_v7 = vpop.f32.mrb[0].mxu0 }
  0xdd   :  { %v86_v9 = vmul.f32 %v122_v6, %v73_v7  ;;  %v133_v10 = vpop.f32.mrb[1].mxu0 }
  0xde   :  { %v76_v11 = vpop.f32.mrb[2].mxu0 }
  0xdf   :  { %v92_v12 = vadd.f32 %v123_v8, %v86_v9  ;;  %v87_v13 = vmul.f32 %v122_v6, %v76_v11  ;;  %v134_v14 = vpop.f32.mrb[3].mxu0 }
  0xe1   :  { %vm94_vm2 = vcmp.ge.f32.partialorder %v92_v12, 0.0  ;;  %v96_v15 = vmul.f32 0.2, %v92_v12  ;;  %v93_v16 = vadd.f32 %v123_v8, %v87_v13 }
  0xe3   :  { %v98_v17 = vsel %vm94_vm2, %v92_v12, %v96_v15  ;;  %vm95_vm4 = vcmp.ge.f32.partialorder %v93_v16, 0.0  ;;  %v97_v18 = vmul.f32 0.2, %v93_v16 }
  0xe4   :  { %101 = vst.msk [vmem:[#allocation2] sm:$0xff] %vm100_vm3, %v98_v17 }
  0xe5   :  { %v99_v19 = vsel %vm95_vm4, %v93_v16, %v97_v18 }
  0xe6   :  { %102 = vst.msk [vmem:[#allocation2 + $0x8] sm:$0xff] %vm100_vm3, %v99_v19 }
  0xe7   :  { %153 = shalt.err (!%p150_p4)
}
  0xe8   :  { %s154_s26 = scalar_lea.hbm %s224_s3, 256 }
  0xe9   :  { %p155_p5 = scmp.ne.s32.totalorder %s224_s3, %s154_s26  ;;  %p158_p6 = scmp.lt.u32.totalorder %s154_s26, %s224_s3 }
  0xeb   :  { %p160_p7 = pnand %p158_p6, %p155_p5 }
  0xed   :  { %163 = shalt.err (!%p160_p7)
}
  0xee   :  { %s169_s4 = smov 128   ;;  %s170_s5 = smov 8  }
  0xef   :  { %114 = dma.vmem_to_hbm [thread:$0]  %s109_s23, 256, %s224_s3, [#allocation3], %s169_s4, %s169_s4, %s170_s5  }
  0xf0   :  { %164 = dma.done.wait [#allocation3], 256  }
  0xf1   :  { %165 = vsyncadd [#allocation3], 4294967040 }
  0xf2   :  { %118 = vsyncpa [#allocation3], 1 }

</bundles_post_ra>
